<compile_context>
chip_gen: v6e
topology: v6e:2x2x1
jax: 0.10.0
libtpu: 0.0.40
codegen_flags: <defaults>
</compile_context>

<pallas_src>
from functools import partial

import jax
import jax.numpy as jnp
from jax.experimental import pallas as pl
from jax.experimental.pallas import tpu as pltpu

# ---- config (matches the nn.Module's config dict) ----
HIDDEN = 32          # hidden_size
KSIZE = 3            # kernel_size (odd -> 'same' length)
PAD = (KSIZE - 1) // 2
NUM_LAYER = 2        # hidden_layer_num
BATCH = 2
SEQ = 8


def _layer_norm(v, gamma, beta, eps=1e-5):
    mu = jnp.mean(v, axis=-1, keepdims=True)
    var = jnp.mean((v - mu) ** 2, axis=-1, keepdims=True)
    return (v - mu) * jax.lax.rsqrt(var + eps) * gamma + beta


def stack_gate_cnn_kernel(x_ref, wconv_ref, w2_ref, vec_ref, o_ref,
                          *, seq_len, num_layer, ksize):
    rows, hidden = x_ref.shape                                # rows = B*L
    x = x_ref[...].astype(jnp.float32)                        # (rows, H)

    # Position of each row inside its own sequence (rows are (batch, seq) flattened);
    # used to zero out shifted rows that would cross a sequence boundary ('same' pad),
    # including the batch seam.
    pos = jax.lax.broadcasted_iota(jnp.int32, (rows, 1), 0) % seq_len
    has_prev = pos != 0
    has_next = pos != seq_len - 1

    for i in range(num_layer):                                # static unroll over layers
        vecs = vec_ref[i]                                     # (5, H) f32
        b2 = vecs[0:1]
        g1 = vecs[1:2]
        be1 = vecs[2:3]
        g2 = vecs[3:4]
        be2 = vecs[4:5]

        # Shifted copies of the resident tile via sublane rolls (row l holds x[l-1] /
        # x[l+1]); sequence edges zeroed by the iota mask, so the wrapped rows never
        # contribute.
        x_prev = jnp.where(has_prev, pltpu.roll(x, shift=1, axis=0), 0.0)
        x_next = jnp.where(has_next, pltpu.roll(x, shift=rows - 1, axis=0), 0.0)

        # Conv + gate-conv as per-tap accumulating (rows,H)x(H,H) bf16 MXU dots with
        # f32 accumulation.  Tap dk multiplies x[l + dk - PAD]; wconv_ref[i, dk] is the
        # conv tap, wconv_ref[i, ksize + dk] the gate tap.
        taps = (x_prev, x, x_next)
        conv_x = jnp.zeros((rows, hidden), jnp.float32)
        gate_pre = jnp.zeros((rows, hidden), jnp.float32)
        for dk in range(ksize):
            t_bf = taps[dk].astype(jnp.bfloat16)
            conv_x = conv_x + jnp.dot(t_bf, wconv_ref[i, dk],
                                      preferred_element_type=jnp.float32)
            gate_pre = gate_pre + jnp.dot(t_bf, wconv_ref[i, ksize + dk],
                                          preferred_element_type=jnp.float32)
        gate = jax.nn.sigmoid(gate_pre)                       # EUP, f32

        # GateCNN output, residual + LayerNorm (all f32 elementwise).
        x = _layer_norm(x + conv_x * gate, g1, be1)

        # PyTorch forward overwrites ff: only linear2(x) survives (linear1/ReLU dead).
        ff = jnp.dot(x.astype(jnp.bfloat16), w2_ref[i],
                     preferred_element_type=jnp.float32) + b2
        x = _layer_norm(x + ff, g2, be2)

    o_ref[...] = x.astype(o_ref.dtype)


def prepare_params(params):
    """One-time parameter prep: pack conv+gate taps, pre-cast MXU weights to bf16,
    and pack the five per-layer vectors into a single slab."""
    wc, wg, w2, b2, g1, be1, g2, be2 = params
    # (NUM_LAYER, 2*K, H, H): [:, :K] = conv taps, [:, K:] = gate taps.
    wconv = jnp.concatenate([wc, wg], axis=1).astype(jnp.bfloat16)
    w2_bf = w2.astype(jnp.bfloat16)                           # (NUM_LAYER, H, H)
    vecs = jnp.stack([b2, g1, be1, g2, be2], axis=1)          # (NUM_LAYER, 5, H) f32
    return wconv, w2_bf, vecs


def stack_gate_cnn(x, wconv, w2_bf, vecs):
    B, L, H = x.shape
    num_layer = wconv.shape[0]
    ksize = wconv.shape[1] // 2
    x2d = x.reshape(B * L, H)

    kernel = partial(stack_gate_cnn_kernel, seq_len=L, num_layer=num_layer, ksize=ksize)
    out = pl.pallas_call(
        kernel,
        out_shape=jax.ShapeDtypeStruct((B * L, H), jnp.float32),
        in_specs=[pl.BlockSpec(memory_space=pltpu.MemorySpace.VMEM)
                  for _ in range(4)],
        out_specs=pl.BlockSpec(memory_space=pltpu.MemorySpace.VMEM),
    )(x2d, wconv, w2_bf, vecs)
    return out.reshape(B, L, H)


# ---- pure-JAX reference (same math, structured differently, no Pallas) ----
def reference(x, params):
    wc, wg, w2, b2, g1, be1, g2, be2 = params

    def conv(xin, w_taps):
        L = xin.shape[1]
        xp = jnp.pad(xin, ((0, 0), (PAD, PAD), (0, 0)))
        out = jnp.zeros(xin.shape[:2] + (w_taps.shape[-1],), jnp.float32)
        for dk in range(KSIZE):
            out = out + jnp.einsum('blh,ho->blo',
                                   xp[:, dk:dk + L, :].astype(jnp.bfloat16),
                                   w_taps[dk].astype(jnp.bfloat16),
                                   preferred_element_type=jnp.float32)
        return out

    for i in range(NUM_LAYER):
        gcnn_x = conv(x, wc[i]) * jax.nn.sigmoid(conv(x, wg[i]))
        x = _layer_norm(x + gcnn_x, g1[i], be1[i])
        # Dead linear1 / ReLU replicated as absent; only linear2 survives.
        ff = jnp.einsum('blh,ho->blo', x.astype(jnp.bfloat16),
                        w2[i].astype(jnp.bfloat16),
                        preferred_element_type=jnp.float32) + b2[i]
        x = _layer_norm(x + ff, g2[i], be2[i])
    return x


def make_params(key):
    # NOTE: conv-tap convention is (K, H_in, H_out) with tap dk multiplying
    # x[l + dk - PAD]; importing real PyTorch Conv1d weights (H_out, H_in, K)
    # requires a transpose to this layout.
    ks = jax.random.split(key, 8)
    wc = 0.1 * jax.random.normal(ks[0], (NUM_LAYER, KSIZE, HIDDEN, HIDDEN), jnp.float32)
    wg = 0.1 * jax.random.normal(ks[1], (NUM_LAYER, KSIZE, HIDDEN, HIDDEN), jnp.float32)
    w2 = 0.1 * jax.random.normal(ks[2], (NUM_LAYER, HIDDEN, HIDDEN), jnp.float32)
    b2 = 0.01 * jax.random.normal(ks[3], (NUM_LAYER, HIDDEN), jnp.float32)
    g1 = 1.0 + 0.01 * jax.random.normal(ks[4], (NUM_LAYER, HIDDEN), jnp.float32)
    be1 = 0.01 * jax.random.normal(ks[5], (NUM_LAYER, HIDDEN), jnp.float32)
    g2 = 1.0 + 0.01 * jax.random.normal(ks[6], (NUM_LAYER, HIDDEN), jnp.float32)
    be2 = 0.01 * jax.random.normal(ks[7], (NUM_LAYER, HIDDEN), jnp.float32)
    return wc, wg, w2, b2, g1, be1, g2, be2


if __name__ == "__main__":
    key = jax.random.PRNGKey(0)
    kx, kp = jax.random.split(key)
    x = jax.random.normal(kx, (BATCH, SEQ, HIDDEN), jnp.float32)
    params = make_params(kp)

    # One-time packing / bf16 cast (kept out of the kernel call path).
    wconv, w2_bf, vecs = prepare_params(params)

    out = jax.block_until_ready(stack_gate_cnn(x, wconv, w2_bf, vecs))
    ref = jax.block_until_ready(reference(x, params))

    assert out.shape == (BATCH, SEQ, HIDDEN)
    assert jnp.allclose(out, ref, atol=1e-3, rtol=1e-3), \
        f"max abs err {float(jnp.max(jnp.abs(out - ref)))}"
    print("KERNEL_OK")
</pallas_src>

<mosaic_0001>
module attributes {stable_mosaic.version = 11 : i64} {
  func.func @stack_gate_cnn_kernel(%arg0: memref<16x32xf32, #tpu.memory_space<vmem>>, %arg1: memref<2x6x32x32xbf16, #tpu.memory_space<vmem>>, %arg2: memref<2x32x32xbf16, #tpu.memory_space<vmem>>, %arg3: memref<2x5x32xf32, #tpu.memory_space<vmem>>, %arg4: memref<16x32xf32, #tpu.memory_space<vmem>>) attributes {dimension_semantics = [], scalar_prefetch = 0 : i64, scratch_operands = 0 : i64, tpu.core_type = #tpu.core_type<tc>} {
    %c0 = arith.constant 0 : index
    %c0_0 = arith.constant 0 : index
    %0 = vector.load %arg0[%c0, %c0_0] : memref<16x32xf32, #tpu.memory_space<vmem>>, vector<16x32xf32>
    %1 = tpu.iota {dimensions = array<i32: 0>} : vector<16x1xi32>
    %c8_i32 = arith.constant 8 : i32
    %c0_i32 = arith.constant 0 : i32
    %2 = arith.cmpi eq, %c8_i32, %c0_i32 : i32
    %c1_i32 = arith.constant 1 : i32
    %3 = arith.select %2, %c1_i32, %c8_i32 : i32
    %4 = vector.broadcast %3 : i32 to vector<16x1xi32>
    %5 = arith.remsi %1, %4 : vector<16x1xi32>
    %c0_i32_1 = arith.constant 0 : i32
    %6 = vector.broadcast %c0_i32_1 : i32 to vector<16x1xi32>
    %7 = arith.cmpi ne, %5, %6 : vector<16x1xi32>
    %c0_i32_2 = arith.constant 0 : i32
    %8 = vector.broadcast %c0_i32_2 : i32 to vector<16x1xi32>
    %9 = arith.cmpi slt, %5, %8 : vector<16x1xi32>
    %c0_i32_3 = arith.constant 0 : i32
    %10 = arith.cmpi slt, %3, %c0_i32_3 : i32
    %11 = vector.broadcast %10 : i1 to vector<16x1xi1>
    %12 = vector.broadcast %11 : vector<16x1xi1> to vector<16x1xi1>
    %13 = arith.xori %9, %12 : vector<16x1xi1>
    %14 = arith.andi %13, %7 : vector<16x1xi1>
    %15 = vector.broadcast %3 : i32 to vector<16x1xi32>
    %16 = arith.addi %5, %15 : vector<16x1xi32>
    %17 = arith.select %14, %16, %5 : vector<16x1xi1>, vector<16x1xi32>
    %c0_i32_4 = arith.constant 0 : i32
    %18 = vector.broadcast %c0_i32_4 : i32 to vector<16x1xi32>
    %19 = arith.cmpi ne, %17, %18 : vector<16x1xi32>
    %c7_i32 = arith.constant 7 : i32
    %20 = vector.broadcast %c7_i32 : i32 to vector<16x1xi32>
    %21 = arith.cmpi ne, %17, %20 : vector<16x1xi32>
    %c0_5 = arith.constant 0 : index
    %c0_6 = arith.constant 0 : index
    %c0_7 = arith.constant 0 : index
    %22 = vector.load %arg3[%c0_5, %c0_6, %c0_7] : memref<2x5x32xf32, #tpu.memory_space<vmem>>, vector<1x5x32xf32>
    %23 = vector.shape_cast %22 : vector<1x5x32xf32> to vector<5x32xf32>
    %24 = vector.extract_strided_slice %23 {offsets = [0, 0], sizes = [1, 32], strides = [1, 1]} : vector<5x32xf32> to vector<1x32xf32>
    %25 = vector.extract_strided_slice %23 {offsets = [1, 0], sizes = [1, 32], strides = [1, 1]} : vector<5x32xf32> to vector<1x32xf32>
    %26 = vector.extract_strided_slice %23 {offsets = [2, 0], sizes = [1, 32], strides = [1, 1]} : vector<5x32xf32> to vector<1x32xf32>
    %27 = vector.extract_strided_slice %23 {offsets = [3, 0], sizes = [1, 32], strides = [1, 1]} : vector<5x32xf32> to vector<1x32xf32>
    %28 = vector.extract_strided_slice %23 {offsets = [4, 0], sizes = [1, 32], strides = [1, 1]} : vector<5x32xf32> to vector<1x32xf32>
    %c1_i32_8 = arith.constant 1 : i32
    %29 = tpu.dynamic_rotate %0 by %c1_i32_8 dim 0 : vector<16x32xf32>, i32 -> vector<16x32xf32>
    %cst = arith.constant 0.000000e+00 : f32
    %30 = vector.shape_cast %19 : vector<16x1xi1> to vector<16x1xi1>
    %31 = vector.broadcast %30 : vector<16x1xi1> to vector<16x32xi1>
    %32 = vector.broadcast %cst : f32 to vector<16x32xf32>
    %33 = arith.select %31, %29, %32 : vector<16x32xi1>, vector<16x32xf32>
    %c15_i32 = arith.constant 15 : i32
    %34 = tpu.dynamic_rotate %0 by %c15_i32 dim 0 : vector<16x32xf32>, i32 -> vector<16x32xf32>
    %cst_9 = arith.constant 0.000000e+00 : f32
    %35 = vector.shape_cast %21 : vector<16x1xi1> to vector<16x1xi1>
    %36 = vector.broadcast %35 : vector<16x1xi1> to vector<16x32xi1>
    %37 = vector.broadcast %cst_9 : f32 to vector<16x32xf32>
    %38 = arith.select %36, %34, %37 : vector<16x32xi1>, vector<16x32xf32>
    %cst_10 = arith.constant 0.000000e+00 : f32
    %39 = vector.broadcast %cst_10 : f32 to vector<16x32xf32>
    %cst_11 = arith.constant 0.000000e+00 : f32
    %40 = vector.broadcast %cst_11 : f32 to vector<16x32xf32>
    %41 = arith.truncf %33 : vector<16x32xf32> to vector<16x32xbf16>
    %c0_12 = arith.constant 0 : index
    %c0_13 = arith.constant 0 : index
    %c0_14 = arith.constant 0 : index
    %c0_15 = arith.constant 0 : index
    %42 = vector.load %arg1[%c0_12, %c0_13, %c0_14, %c0_15] : memref<2x6x32x32xbf16, #tpu.memory_space<vmem>>, vector<1x1x32x32xbf16>
    %43 = vector.shape_cast %42 : vector<1x1x32x32xbf16> to vector<32x32xbf16>
    %cst_16 = arith.constant dense<0.000000e+00> : vector<16x32xf32>
    %44 = tpu.matmul %41, %43, %cst_16 {dimension_numbers = #tpu.dot_dimension_numbers<[1], [0], [0], [1], [0, 0, 1, 1], [], []>} : vector<16x32xbf16>, vector<32x32xbf16>, vector<16x32xf32> -> vector<16x32xf32>
    %45 = arith.addf %39, %44 : vector<16x32xf32>
    %c0_17 = arith.constant 0 : index
    %c3 = arith.constant 3 : index
    %c0_18 = arith.constant 0 : index
    %c0_19 = arith.constant 0 : index
    %46 = vector.load %arg1[%c0_17, %c3, %c0_18, %c0_19] : memref<2x6x32x32xbf16, #tpu.memory_space<vmem>>, vector<1x1x32x32xbf16>
    %47 = vector.shape_cast %46 : vector<1x1x32x32xbf16> to vector<32x32xbf16>
    %cst_20 = arith.constant dense<0.000000e+00> : vector<16x32xf32>
    %48 = tpu.matmul %41, %47, %cst_20 {dimension_numbers = #tpu.dot_dimension_numbers<[1], [0], [0], [1], [0, 0, 1, 1], [], []>} : vector<16x32xbf16>, vector<32x32xbf16>, vector<16x32xf32> -> vector<16x32xf32>
    %49 = arith.addf %40, %48 : vector<16x32xf32>
    %50 = arith.truncf %0 : vector<16x32xf32> to vector<16x32xbf16>
    %c0_21 = arith.constant 0 : index
    %c1 = arith.constant 1 : index
    %c0_22 = arith.constant 0 : index
    %c0_23 = arith.constant 0 : index
    %51 = vector.load %arg1[%c0_21, %c1, %c0_22, %c0_23] : memref<2x6x32x32xbf16, #tpu.memory_space<vmem>>, vector<1x1x32x32xbf16>
    %52 = vector.shape_cast %51 : vector<1x1x32x32xbf16> to vector<32x32xbf16>
    %cst_24 = arith.constant dense<0.000000e+00> : vector<16x32xf32>
    %53 = tpu.matmul %50, %52, %cst_24 {dimension_numbers = #tpu.dot_dimension_numbers<[1], [0], [0], [1], [0, 0, 1, 1], [], []>} : vector<16x32xbf16>, vector<32x32xbf16>, vector<16x32xf32> -> vector<16x32xf32>
    %54 = arith.addf %45, %53 : vector<16x32xf32>
    %c0_25 = arith.constant 0 : index
    %c4 = arith.constant 4 : index
    %c0_26 = arith.constant 0 : index
    %c0_27 = arith.constant 0 : index
    %55 = vector.load %arg1[%c0_25, %c4, %c0_26, %c0_27] : memref<2x6x32x32xbf16, #tpu.memory_space<vmem>>, vector<1x1x32x32xbf16>
    %56 = vector.shape_cast %55 : vector<1x1x32x32xbf16> to vector<32x32xbf16>
    %cst_28 = arith.constant dense<0.000000e+00> : vector<16x32xf32>
    %57 = tpu.matmul %50, %56, %cst_28 {dimension_numbers = #tpu.dot_dimension_numbers<[1], [0], [0], [1], [0, 0, 1, 1], [], []>} : vector<16x32xbf16>, vector<32x32xbf16>, vector<16x32xf32> -> vector<16x32xf32>
    %58 = arith.addf %49, %57 : vector<16x32xf32>
    %59 = arith.truncf %38 : vector<16x32xf32> to vector<16x32xbf16>
    %c0_29 = arith.constant 0 : index
    %c2 = arith.constant 2 : index
    %c0_30 = arith.constant 0 : index
    %c0_31 = arith.constant 0 : index
    %60 = vector.load %arg1[%c0_29, %c2, %c0_30, %c0_31] : memref<2x6x32x32xbf16, #tpu.memory_space<vmem>>, vector<1x1x32x32xbf16>
    %61 = vector.shape_cast %60 : vector<1x1x32x32xbf16> to vector<32x32xbf16>
    %cst_32 = arith.constant dense<0.000000e+00> : vector<16x32xf32>
    %62 = tpu.matmul %59, %61, %cst_32 {dimension_numbers = #tpu.dot_dimension_numbers<[1], [0], [0], [1], [0, 0, 1, 1], [], []>} : vector<16x32xbf16>, vector<32x32xbf16>, vector<16x32xf32> -> vector<16x32xf32>
    %63 = arith.addf %54, %62 : vector<16x32xf32>
    %c0_33 = arith.constant 0 : index
    %c5 = arith.constant 5 : index
    %c0_34 = arith.constant 0 : index
    %c0_35 = arith.constant 0 : index
    %64 = vector.load %arg1[%c0_33, %c5, %c0_34, %c0_35] : memref<2x6x32x32xbf16, #tpu.memory_space<vmem>>, vector<1x1x32x32xbf16>
    %65 = vector.shape_cast %64 : vector<1x1x32x32xbf16> to vector<32x32xbf16>
    %cst_36 = arith.constant dense<0.000000e+00> : vector<16x32xf32>
    %66 = tpu.matmul %59, %65, %cst_36 {dimension_numbers = #tpu.dot_dimension_numbers<[1], [0], [0], [1], [0, 0, 1, 1], [], []>} : vector<16x32xbf16>, vector<32x32xbf16>, vector<16x32xf32> -> vector<16x32xf32>
    %67 = arith.addf %58, %66 : vector<16x32xf32>
    %68 = arith.negf %67 : vector<16x32xf32>
    %69 = math.exp %68 : vector<16x32xf32>
    %cst_37 = arith.constant 1.000000e+00 : f32
    %70 = vector.broadcast %cst_37 : f32 to vector<16x32xf32>
    %71 = arith.addf %70, %69 : vector<16x32xf32>
    %72 = arith.divf %70, %71 : vector<16x32xf32>
    %73 = arith.mulf %63, %72 : vector<16x32xf32>
    %74 = arith.addf %0, %73 : vector<16x32xf32>
    %cst_38 = arith.constant dense<0.000000e+00> : vector<16xf32>
    %75 = vector.multi_reduction <add>, %74, %cst_38 [1] : vector<16x32xf32> to vector<16xf32>
    %76 = vector.shape_cast %75 : vector<16xf32> to vector<16x1xf32>
    %cst_39 = arith.constant 3.200000e+01 : f32
    %77 = vector.broadcast %cst_39 : f32 to vector<16x1xf32>
    %78 = arith.divf %76, %77 : vector<16x1xf32>
    %79 = vector.broadcast %78 : vector<16x1xf32> to vector<16x32xf32>
    %80 = arith.subf %74, %79 : vector<16x32xf32>
    %81 = arith.mulf %80, %80 : vector<16x32xf32>
    %cst_40 = arith.constant dense<0.000000e+00> : vector<16xf32>
    %82 = vector.multi_reduction <add>, %81, %cst_40 [1] : vector<16x32xf32> to vector<16xf32>
    %83 = vector.shape_cast %82 : vector<16xf32> to vector<16x1xf32>
    %cst_41 = arith.constant 3.200000e+01 : f32
    %84 = vector.broadcast %cst_41 : f32 to vector<16x1xf32>
    %85 = arith.divf %83, %84 : vector<16x1xf32>
    %86 = vector.broadcast %78 : vector<16x1xf32> to vector<16x32xf32>
    %87 = arith.subf %74, %86 : vector<16x32xf32>
    %cst_42 = arith.constant 9.99999974E-6 : f32
    %88 = vector.broadcast %cst_42 : f32 to vector<16x1xf32>
    %89 = arith.addf %85, %88 : vector<16x1xf32>
    %90 = math.rsqrt %89 : vector<16x1xf32>
    %91 = vector.broadcast %90 : vector<16x1xf32> to vector<16x32xf32>
    %92 = arith.mulf %87, %91 : vector<16x32xf32>
    %93 = vector.broadcast %25 : vector<1x32xf32> to vector<16x32xf32>
    %94 = arith.mulf %92, %93 : vector<16x32xf32>
    %95 = vector.broadcast %26 : vector<1x32xf32> to vector<16x32xf32>
    %96 = arith.addf %94, %95 : vector<16x32xf32>
    %97 = arith.truncf %96 : vector<16x32xf32> to vector<16x32xbf16>
    %c0_43 = arith.constant 0 : index
    %c0_44 = arith.constant 0 : index
    %c0_45 = arith.constant 0 : index
    %98 = vector.load %arg2[%c0_43, %c0_44, %c0_45] : memref<2x32x32xbf16, #tpu.memory_space<vmem>>, vector<1x32x32xbf16>
    %99 = vector.shape_cast %98 : vector<1x32x32xbf16> to vector<32x32xbf16>
    %cst_46 = arith.constant dense<0.000000e+00> : vector<16x32xf32>
    %100 = tpu.matmul %97, %99, %cst_46 {dimension_numbers = #tpu.dot_dimension_numbers<[1], [0], [0], [1], [0, 0, 1, 1], [], []>} : vector<16x32xbf16>, vector<32x32xbf16>, vector<16x32xf32> -> vector<16x32xf32>
    %101 = vector.broadcast %24 : vector<1x32xf32> to vector<16x32xf32>
    %102 = arith.addf %100, %101 : vector<16x32xf32>
    %103 = arith.addf %96, %102 : vector<16x32xf32>
    %cst_47 = arith.constant dense<0.000000e+00> : vector<16xf32>
    %104 = vector.multi_reduction <add>, %103, %cst_47 [1] : vector<16x32xf32> to vector<16xf32>
    %105 = vector.shape_cast %104 : vector<16xf32> to vector<16x1xf32>
    %cst_48 = arith.constant 3.200000e+01 : f32
    %106 = vector.broadcast %cst_48 : f32 to vector<16x1xf32>
    %107 = arith.divf %105, %106 : vector<16x1xf32>
    %108 = vector.broadcast %107 : vector<16x1xf32> to vector<16x32xf32>
    %109 = arith.subf %103, %108 : vector<16x32xf32>
    %110 = arith.mulf %109, %109 : vector<16x32xf32>
    %cst_49 = arith.constant dense<0.000000e+00> : vector<16xf32>
    %111 = vector.multi_reduction <add>, %110, %cst_49 [1] : vector<16x32xf32> to vector<16xf32>
    %112 = vector.shape_cast %111 : vector<16xf32> to vector<16x1xf32>
    %cst_50 = arith.constant 3.200000e+01 : f32
    %113 = vector.broadcast %cst_50 : f32 to vector<16x1xf32>
    %114 = arith.divf %112, %113 : vector<16x1xf32>
    %115 = vector.broadcast %107 : vector<16x1xf32> to vector<16x32xf32>
    %116 = arith.subf %103, %115 : vector<16x32xf32>
    %cst_51 = arith.constant 9.99999974E-6 : f32
    %117 = vector.broadcast %cst_51 : f32 to vector<16x1xf32>
    %118 = arith.addf %114, %117 : vector<16x1xf32>
    %119 = math.rsqrt %118 : vector<16x1xf32>
    %120 = vector.broadcast %119 : vector<16x1xf32> to vector<16x32xf32>
    %121 = arith.mulf %116, %120 : vector<16x32xf32>
    %122 = vector.broadcast %27 : vector<1x32xf32> to vector<16x32xf32>
    %123 = arith.mulf %121, %122 : vector<16x32xf32>
    %124 = vector.broadcast %28 : vector<1x32xf32> to vector<16x32xf32>
    %125 = arith.addf %123, %124 : vector<16x32xf32>
    %c1_52 = arith.constant 1 : index
    %c0_53 = arith.constant 0 : index
    %c0_54 = arith.constant 0 : index
    %126 = vector.load %arg3[%c1_52, %c0_53, %c0_54] : memref<2x5x32xf32, #tpu.memory_space<vmem>>, vector<1x5x32xf32>
    %127 = vector.shape_cast %126 : vector<1x5x32xf32> to vector<5x32xf32>
    %128 = vector.extract_strided_slice %127 {offsets = [0, 0], sizes = [1, 32], strides = [1, 1]} : vector<5x32xf32> to vector<1x32xf32>
    %129 = vector.extract_strided_slice %127 {offsets = [1, 0], sizes = [1, 32], strides = [1, 1]} : vector<5x32xf32> to vector<1x32xf32>
    %130 = vector.extract_strided_slice %127 {offsets = [2, 0], sizes = [1, 32], strides = [1, 1]} : vector<5x32xf32> to vector<1x32xf32>
    %131 = vector.extract_strided_slice %127 {offsets = [3, 0], sizes = [1, 32], strides = [1, 1]} : vector<5x32xf32> to vector<1x32xf32>
    %132 = vector.extract_strided_slice %127 {offsets = [4, 0], sizes = [1, 32], strides = [1, 1]} : vector<5x32xf32> to vector<1x32xf32>
    %c1_i32_55 = arith.constant 1 : i32
    %133 = tpu.dynamic_rotate %125 by %c1_i32_55 dim 0 : vector<16x32xf32>, i32 -> vector<16x32xf32>
    %cst_56 = arith.constant 0.000000e+00 : f32
    %134 = vector.shape_cast %19 : vector<16x1xi1> to vector<16x1xi1>
    %135 = vector.broadcast %134 : vector<16x1xi1> to vector<16x32xi1>
    %136 = vector.broadcast %cst_56 : f32 to vector<16x32xf32>
    %137 = arith.select %135, %133, %136 : vector<16x32xi1>, vector<16x32xf32>
    %c15_i32_57 = arith.constant 15 : i32
    %138 = tpu.dynamic_rotate %125 by %c15_i32_57 dim 0 : vector<16x32xf32>, i32 -> vector<16x32xf32>
    %cst_58 = arith.constant 0.000000e+00 : f32
    %139 = vector.shape_cast %21 : vector<16x1xi1> to vector<16x1xi1>
    %140 = vector.broadcast %139 : vector<16x1xi1> to vector<16x32xi1>
    %141 = vector.broadcast %cst_58 : f32 to vector<16x32xf32>
    %142 = arith.select %140, %138, %141 : vector<16x32xi1>, vector<16x32xf32>
    %cst_59 = arith.constant 0.000000e+00 : f32
    %143 = vector.broadcast %cst_59 : f32 to vector<16x32xf32>
    %cst_60 = arith.constant 0.000000e+00 : f32
    %144 = vector.broadcast %cst_60 : f32 to vector<16x32xf32>
    %145 = arith.truncf %137 : vector<16x32xf32> to vector<16x32xbf16>
    %c1_61 = arith.constant 1 : index
    %c0_62 = arith.constant 0 : index
    %c0_63 = arith.constant 0 : index
    %c0_64 = arith.constant 0 : index
    %146 = vector.load %arg1[%c1_61, %c0_62, %c0_63, %c0_64] : memref<2x6x32x32xbf16, #tpu.memory_space<vmem>>, vector<1x1x32x32xbf16>
    %147 = vector.shape_cast %146 : vector<1x1x32x32xbf16> to vector<32x32xbf16>
    %cst_65 = arith.constant dense<0.000000e+00> : vector<16x32xf32>
    %148 = tpu.matmul %145, %147, %cst_65 {dimension_numbers = #tpu.dot_dimension_numbers<[1], [0], [0], [1], [0, 0, 1, 1], [], []>} : vector<16x32xbf16>, vector<32x32xbf16>, vector<16x32xf32> -> vector<16x32xf32>
    %149 = arith.addf %143, %148 : vector<16x32xf32>
    %c1_66 = arith.constant 1 : index
    %c3_67 = arith.constant 3 : index
    %c0_68 = arith.constant 0 : index
    %c0_69 = arith.constant 0 : index
    %150 = vector.load %arg1[%c1_66, %c3_67, %c0_68, %c0_69] : memref<2x6x32x32xbf16, #tpu.memory_space<vmem>>, vector<1x1x32x32xbf16>
    %151 = vector.shape_cast %150 : vector<1x1x32x32xbf16> to vector<32x32xbf16>
    %cst_70 = arith.constant dense<0.000000e+00> : vector<16x32xf32>
    %152 = tpu.matmul %145, %151, %cst_70 {dimension_numbers = #tpu.dot_dimension_numbers<[1], [0], [0], [1], [0, 0, 1, 1], [], []>} : vector<16x32xbf16>, vector<32x32xbf16>, vector<16x32xf32> -> vector<16x32xf32>
    %153 = arith.addf %144, %152 : vector<16x32xf32>
    %154 = arith.truncf %125 : vector<16x32xf32> to vector<16x32xbf16>
    %c1_71 = arith.constant 1 : index
    %c1_72 = arith.constant 1 : index
    %c0_73 = arith.constant 0 : index
    %c0_74 = arith.constant 0 : index
    %155 = vector.load %arg1[%c1_71, %c1_72, %c0_73, %c0_74] : memref<2x6x32x32xbf16, #tpu.memory_space<vmem>>, vector<1x1x32x32xbf16>
    %156 = vector.shape_cast %155 : vector<1x1x32x32xbf16> to vector<32x32xbf16>
    %cst_75 = arith.constant dense<0.000000e+00> : vector<16x32xf32>
    %157 = tpu.matmul %154, %156, %cst_75 {dimension_numbers = #tpu.dot_dimension_numbers<[1], [0], [0], [1], [0, 0, 1, 1], [], []>} : vector<16x32xbf16>, vector<32x32xbf16>, vector<16x32xf32> -> vector<16x32xf32>
    %158 = arith.addf %149, %157 : vector<16x32xf32>
    %c1_76 = arith.constant 1 : index
    %c4_77 = arith.constant 4 : index
    %c0_78 = arith.constant 0 : index
    %c0_79 = arith.constant 0 : index
    %159 = vector.load %arg1[%c1_76, %c4_77, %c0_78, %c0_79] : memref<2x6x32x32xbf16, #tpu.memory_space<vmem>>, vector<1x1x32x32xbf16>
    %160 = vector.shape_cast %159 : vector<1x1x32x32xbf16> to vector<32x32xbf16>
    %cst_80 = arith.constant dense<0.000000e+00> : vector<16x32xf32>
    %161 = tpu.matmul %154, %160, %cst_80 {dimension_numbers = #tpu.dot_dimension_numbers<[1], [0], [0], [1], [0, 0, 1, 1], [], []>} : vector<16x32xbf16>, vector<32x32xbf16>, vector<16x32xf32> -> vector<16x32xf32>
    %162 = arith.addf %153, %161 : vector<16x32xf32>
    %163 = arith.truncf %142 : vector<16x32xf32> to vector<16x32xbf16>
    %c1_81 = arith.constant 1 : index
    %c2_82 = arith.constant 2 : index
    %c0_83 = arith.constant 0 : index
    %c0_84 = arith.constant 0 : index
    %164 = vector.load %arg1[%c1_81, %c2_82, %c0_83, %c0_84] : memref<2x6x32x32xbf16, #tpu.memory_space<vmem>>, vector<1x1x32x32xbf16>
    %165 = vector.shape_cast %164 : vector<1x1x32x32xbf16> to vector<32x32xbf16>
    %cst_85 = arith.constant dense<0.000000e+00> : vector<16x32xf32>
    %166 = tpu.matmul %163, %165, %cst_85 {dimension_numbers = #tpu.dot_dimension_numbers<[1], [0], [0], [1], [0, 0, 1, 1], [], []>} : vector<16x32xbf16>, vector<32x32xbf16>, vector<16x32xf32> -> vector<16x32xf32>
    %167 = arith.addf %158, %166 : vector<16x32xf32>
    %c1_86 = arith.constant 1 : index
    %c5_87 = arith.constant 5 : index
    %c0_88 = arith.constant 0 : index
    %c0_89 = arith.constant 0 : index
    %168 = vector.load %arg1[%c1_86, %c5_87, %c0_88, %c0_89] : memref<2x6x32x32xbf16, #tpu.memory_space<vmem>>, vector<1x1x32x32xbf16>
    %169 = vector.shape_cast %168 : vector<1x1x32x32xbf16> to vector<32x32xbf16>
    %cst_90 = arith.constant dense<0.000000e+00> : vector<16x32xf32>
    %170 = tpu.matmul %163, %169, %cst_90 {dimension_numbers = #tpu.dot_dimension_numbers<[1], [0], [0], [1], [0, 0, 1, 1], [], []>} : vector<16x32xbf16>, vector<32x32xbf16>, vector<16x32xf32> -> vector<16x32xf32>
    %171 = arith.addf %162, %170 : vector<16x32xf32>
    %172 = arith.negf %171 : vector<16x32xf32>
    %173 = math.exp %172 : vector<16x32xf32>
    %cst_91 = arith.constant 1.000000e+00 : f32
    %174 = vector.broadcast %cst_91 : f32 to vector<16x32xf32>
    %175 = arith.addf %174, %173 : vector<16x32xf32>
    %176 = arith.divf %174, %175 : vector<16x32xf32>
    %177 = arith.mulf %167, %176 : vector<16x32xf32>
    %178 = arith.addf %125, %177 : vector<16x32xf32>
    %cst_92 = arith.constant dense<0.000000e+00> : vector<16xf32>
    %179 = vector.multi_reduction <add>, %178, %cst_92 [1] : vector<16x32xf32> to vector<16xf32>
    %180 = vector.shape_cast %179 : vector<16xf32> to vector<16x1xf32>
    %cst_93 = arith.constant 3.200000e+01 : f32
    %181 = vector.broadcast %cst_93 : f32 to vector<16x1xf32>
    %182 = arith.divf %180, %181 : vector<16x1xf32>
    %183 = vector.broadcast %182 : vector<16x1xf32> to vector<16x32xf32>
    %184 = arith.subf %178, %183 : vector<16x32xf32>
    %185 = arith.mulf %184, %184 : vector<16x32xf32>
    %cst_94 = arith.constant dense<0.000000e+00> : vector<16xf32>
    %186 = vector.multi_reduction <add>, %185, %cst_94 [1] : vector<16x32xf32> to vector<16xf32>
    %187 = vector.shape_cast %186 : vector<16xf32> to vector<16x1xf32>
    %cst_95 = arith.constant 3.200000e+01 : f32
    %188 = vector.broadcast %cst_95 : f32 to vector<16x1xf32>
    %189 = arith.divf %187, %188 : vector<16x1xf32>
    %190 = vector.broadcast %182 : vector<16x1xf32> to vector<16x32xf32>
    %191 = arith.subf %178, %190 : vector<16x32xf32>
    %cst_96 = arith.constant 9.99999974E-6 : f32
    %192 = vector.broadcast %cst_96 : f32 to vector<16x1xf32>
    %193 = arith.addf %189, %192 : vector<16x1xf32>
    %194 = math.rsqrt %193 : vector<16x1xf32>
    %195 = vector.broadcast %194 : vector<16x1xf32> to vector<16x32xf32>
    %196 = arith.mulf %191, %195 : vector<16x32xf32>
    %197 = vector.broadcast %129 : vector<1x32xf32> to vector<16x32xf32>
    %198 = arith.mulf %196, %197 : vector<16x32xf32>
    %199 = vector.broadcast %130 : vector<1x32xf32> to vector<16x32xf32>
    %200 = arith.addf %198, %199 : vector<16x32xf32>
    %201 = arith.truncf %200 : vector<16x32xf32> to vector<16x32xbf16>
    %c1_97 = arith.constant 1 : index
    %c0_98 = arith.constant 0 : index
    %c0_99 = arith.constant 0 : index
    %202 = vector.load %arg2[%c1_97, %c0_98, %c0_99] : memref<2x32x32xbf16, #tpu.memory_space<vmem>>, vector<1x32x32xbf16>
    %203 = vector.shape_cast %202 : vector<1x32x32xbf16> to vector<32x32xbf16>
    %cst_100 = arith.constant dense<0.000000e+00> : vector<16x32xf32>
    %204 = tpu.matmul %201, %203, %cst_100 {dimension_numbers = #tpu.dot_dimension_numbers<[1], [0], [0], [1], [0, 0, 1, 1], [], []>} : vector<16x32xbf16>, vector<32x32xbf16>, vector<16x32xf32> -> vector<16x32xf32>
    %205 = vector.broadcast %128 : vector<1x32xf32> to vector<16x32xf32>
    %206 = arith.addf %204, %205 : vector<16x32xf32>
    %207 = arith.addf %200, %206 : vector<16x32xf32>
    %cst_101 = arith.constant dense<0.000000e+00> : vector<16xf32>
    %208 = vector.multi_reduction <add>, %207, %cst_101 [1] : vector<16x32xf32> to vector<16xf32>
    %209 = vector.shape_cast %208 : vector<16xf32> to vector<16x1xf32>
    %cst_102 = arith.constant 3.200000e+01 : f32
    %210 = vector.broadcast %cst_102 : f32 to vector<16x1xf32>
    %211 = arith.divf %209, %210 : vector<16x1xf32>
    %212 = vector.broadcast %211 : vector<16x1xf32> to vector<16x32xf32>
    %213 = arith.subf %207, %212 : vector<16x32xf32>
    %214 = arith.mulf %213, %213 : vector<16x32xf32>
    %cst_103 = arith.constant dense<0.000000e+00> : vector<16xf32>
    %215 = vector.multi_reduction <add>, %214, %cst_103 [1] : vector<16x32xf32> to vector<16xf32>
    %216 = vector.shape_cast %215 : vector<16xf32> to vector<16x1xf32>
    %cst_104 = arith.constant 3.200000e+01 : f32
    %217 = vector.broadcast %cst_104 : f32 to vector<16x1xf32>
    %218 = arith.divf %216, %217 : vector<16x1xf32>
    %219 = vector.broadcast %211 : vector<16x1xf32> to vector<16x32xf32>
    %220 = arith.subf %207, %219 : vector<16x32xf32>
    %cst_105 = arith.constant 9.99999974E-6 : f32
    %221 = vector.broadcast %cst_105 : f32 to vector<16x1xf32>
    %222 = arith.addf %218, %221 : vector<16x1xf32>
    %223 = math.rsqrt %222 : vector<16x1xf32>
    %224 = vector.broadcast %223 : vector<16x1xf32> to vector<16x32xf32>
    %225 = arith.mulf %220, %224 : vector<16x32xf32>
    %226 = vector.broadcast %131 : vector<1x32xf32> to vector<16x32xf32>
    %227 = arith.mulf %225, %226 : vector<16x32xf32>
    %228 = vector.broadcast %132 : vector<1x32xf32> to vector<16x32xf32>
    %229 = arith.addf %227, %228 : vector<16x32xf32>
    %c0_106 = arith.constant 0 : index
    %c0_107 = arith.constant 0 : index
    %230 = vector.load %arg4[%c0_106, %c0_107] : memref<16x32xf32, #tpu.memory_space<vmem>>, vector<16x32xf32>
    tpu.vector_store %arg4[%c0_106, %c0_107], %229 {strides = array<i32>} : memref<16x32xf32, #tpu.memory_space<vmem>>, vector<16x32xf32>,
    return
  }
}

</mosaic_0001>

<bundles_post_ra>
// kernel: tpu_custom_call.1
= control target key start
LH: loop header
LB: loop body
LE: loop exit
PB: predicated region body
PF: predicated region fallthrough
CT: control target
= control target key end

     0   :  { %9 = vsyncpa [#allocation3], 0  ;;  %s1774_s0 = inlined_call_operand.vmem [shape: f32[16,32], index: 0, kind: input, shape index: {}]   ;;  %s1775_s1 = inlined_call_operand.hbm [shape: bf16[2,6,32,32], index: 1, kind: input, shape index: {}]   ;;  %s1776_s2 = inlined_call_operand.hbm [shape: bf16[2,32,32], index: 2, kind: input, shape index: {}]   ;;  %s1777_s3 = inlined_call_operand.vmem [shape: f32[2,5,32], index: 3, kind: input, shape index: {}]   ;;  %s1778_s4 = inlined_call_operand.hbm [shape: f32[16,32], index: 4, kind: output, shape index: {}]  }
   0x1   :  { %10 = vsyncpa [#allocation6], 0 }
   0x2   :  { %11 = vsyncpa [#allocation4], 0  ;;  %s1521_s15 = smov [#allocation2]  }
   0x3   :  { %s19_s16 = sshll.u32 %s1521_s15, 4  ;;  %s20_s16 = int_to_ptr.vmem [resolvable:$true] %s19_s16 }
   0x4   :  { %s1463_s17 = scalar_lea.vmem %s20_s16, 3072  ;;  %p1468_p1 = scmp.lt.s32.totalorder %s20_s16, %s20_s16 }
   0x5   :  { %p1464_p0 = scmp.ne.s32.totalorder %s20_s16, %s1463_s17  ;;  %p1469_p2 = scmp.lt.s32.totalorder %s1463_s17, %s1463_s17 }
   0x7   :  { %p1470_p3 = por %p1469_p2, %p1468_p1 }
   0x9   :  { %p1471_p4 = pnand %p1470_p3, %p1464_p0 }
   0xb   :  { %1474 = shalt.err (!%p1471_p4)
}
   0xc   :  { %s1522_s18 = smov 64   ;;  %s1523_s19 = smov 4  }
   0xd   :  { %25 = dma.hbm_to_vmem [thread:$0]  %s1775_s1, 3072, %s20_s16, [#allocation3], %s1522_s18, %s1522_s18, %s1523_s19  }
   0xe   :  { %s1524_s22 = smov [#allocation5]  }
   0xf   :  { %s31_s23 = sshll.u32 %s1524_s22, 4  ;;  %s32_s23 = int_to_ptr.vmem [resolvable:$true] %s31_s23 }
  0x10   :  { %s1483_s24 = scalar_lea.vmem %s32_s23, 512  ;;  %p1488_p6 = scmp.lt.s32.totalorder %s32_s23, %s32_s23 }
  0x11   :  { %p1484_p5 = scmp.ne.s32.totalorder %s32_s23, %s1483_s24  ;;  %p1489_p7 = scmp.lt.s32.totalorder %s1483_s24, %s1483_s24 }
  0x13   :  { %p1490_p8 = por %p1489_p7, %p1488_p6 }
  0x15   :  { %p1491_p9 = pnand %p1490_p8, %p1484_p5 }
  0x17   :  { %1494 = shalt.err (!%p1491_p9)
}
  0x18   :  { %37 = dma.hbm_to_vmem [thread:$0]  %s1776_s2, 512, %s32_s23, [#allocation6], %s1522_s18, %s1522_s18, %s1523_s19  }
  0x19   :  { %1515 = dma.done.wait [#allocation3], 3072  }
  0x1a   :  { %1516 = vsyncadd [#allocation3], 4294964224 }
  0x1b   :  { %1517 = dma.done.wait [#allocation6], 512  }
  0x1c   :  { %1518 = vsyncadd [#allocation6], 4294966784  ;;  %v49_v0 = vlaneseq  ;;  %v1525_v1 = vmov 0.0   ;;  %vm1526_vm0 = vmmov 0   ;;  %v1395_v5 = vld [vmem:[#allocation2 + $0x18] sm:$0xff]   ;;  %v1396_v7 = vld [vmem:[#allocation2 + $0x8] sm:$0xff]  }
  0x1d   :  { %1274 = vmatprep.subr.bf16.mxu0 %v1525_v1  ;;  %1282 = vmatprep.subr.bf16.mxu1 %v1525_v1  ;;  %vm131_vm1 = vcmask 261120   ;;  %v1397_v8 = vld [vmem:[#allocation2 + $0x10] sm:$0xff]   ;;  %v1398_v9 = vld [vmem:[#allocation2] sm:$0xff]   ;;  %v1583_v11 = vld [vmem:[%s1774_s0 + $0x8] sm:$0xff] }
  0x1e   :  { %1278 = vmatprep.mubr.msk.bf16.mxu0 %vm1526_vm0, %v1525_v1  ;;  %1286 = vmatprep.mubr.msk.bf16.mxu1 %vm1526_vm0, %v1525_v1  ;;  %v1567_v2 = vshrl.u32 %v49_v0, 7  ;;  %v1578_v10 = vld [vmem:[%s1774_s0] sm:$0xff]  ;;  %v93_v15 = vrot.slane %v1583_v11, 1  ;;  %v82_v18 = vrot.slane %v1583_v11, 7  ;;  %v1399_v19 = vld [vmem:[#allocation2 + $0x48] sm:$0xff]   ;;  %v1400_v23 = vld [vmem:[#allocation2 + $0x38] sm:$0xff]  }
  0x1f   :  { %1275 = vmatpush3.bf16.msra.mxu0 %v1395_v5  ;;  %1283 = vmatpush3.bf16.msra.mxu1 %v1396_v7  ;;  %v92_v14 = vrot.slane %v1578_v10, 1  ;;  %v113_v16 = vpack.c.bf16 %v1583_v11, %v1578_v10  ;;  %v81_v17 = vrot.slane %v1578_v10, 7  ;;  %v1401_v29 = vld [vmem:[#allocation2 + $0x40] sm:$0xff]   ;;  %v1402_v31 = vld [vmem:[#allocation2 + $0x30] sm:$0xff]   ;;  %v1403_v33 = vld [vmem:[#allocation2 + $0x28] sm:$0xff]  }
  0x20   :  { %v51_v3 = vadd.s32 8, %v1567_v2  ;;  %v56_v4 = vand.u32 7, %v1567_v2  ;;  %vm83_vm2 = vcmp.lt.s32.totalorder %v1567_v2, 1  ;;  %1276 = vmatprep.subr.bf16.mxu0 %v1525_v1  ;;  %vm94_vm3 = vcmp.lt.s32.totalorder %v1567_v2, 7  ;;  %1284 = vmatprep.subr.bf16.mxu1 %v1525_v1  ;;  %v1404_v35 = vld [vmem:[#allocation2 + $0x58] sm:$0xff]   ;;  %v1405_v36 = vld [vmem:[#allocation2 + $0x20] sm:$0xff]  }
  0x21   :  { %v84_v21 = vsel %vm83_vm2, %v81_v17, %v82_v18  ;;  %v85_v22 = vsel %vm83_vm2, %v82_v18, %v81_v17  ;;  %v95_v26 = vsel %vm94_vm3, %v92_v14, %v93_v15  ;;  %v96_v30 = vsel %vm94_vm3, %v93_v15, %v92_v14  ;;  %v1406_v37 = vld [vmem:[#allocation2 + $0x50] sm:$0xff]   ;;  %v1417_v12 = vld [vmem:[#allocation2 + $0x88] sm:$0xff]  }
  0x22   :  { %v63_v6 = vand.u32 7, %v51_v3  ;;  %vm1585_vm4 = vcmp.ne.s32.totalorder %v56_v4, 0  ;;  %vm1600_vm6 = vcmp.ne.s32.totalorder %v56_v4, 7 }
  0x23   :  { %1277 = vmatpush3.bf16.msra.mxu0 %v1397_v8  ;;  %1285 = vmatpush3.bf16.msra.mxu1 %v1398_v9  ;;  %v90_v24 = vsel %vm1585_vm4, %v85_v22, 0.0  ;;  %v101_v32 = vsel %vm1600_vm6, %v95_v26, 0.0 }
  0x24   :  { %vm1589_vm5 = vcmp.ne.s32.totalorder %v63_v6, 0  ;;  %1290 = vmatprep.subr.bf16.mxu0 %v1525_v1  ;;  %1298 = vmatprep.subr.bf16.mxu1 %v1525_v1  ;;  %vm1616_vm7 = vcmp.ne.s32.totalorder %v63_v6, 7 }
  0x25   :  { %v91_v25 = vsel %vm1589_vm5, %v84_v21, 0.0  ;;  %v102_v34 = vsel %vm1616_vm7, %v96_v30, 0.0 }
  0x26   :  { %1279 = vmatmul.mubr.msk.bf16.vlgmr.msra.gmra.mxu0 %vm131_vm1, %v113_v16  ;;  %v103_v28 = vpack.c.bf16 %v91_v25, %v90_v24  ;;  %v343_v38 = vpack.c.bf16 %v102_v34, %v101_v32 }
  0x27   :  { %1291 = vmatpush3.bf16.msra.mxu0 %v1399_v19  ;;  %1294 = vmatprep.mubr.msk.bf16.mxu0 %vm1526_vm0, %v1525_v1 }
  0x28   :  { %1292 = vmatprep.subr.bf16.mxu0 %v1525_v1  ;;  %1287 = vmatmul.mubr.msk.bf16.vlgmr.msra.gmra.mxu1 %vm131_vm1, %v103_v28 }
  0x29   :  { %1299 = vmatpush3.bf16.msra.mxu1 %v1400_v23  ;;  %1302 = vmatprep.mubr.msk.bf16.mxu1 %vm1526_vm0, %v1525_v1 }
  0x2a   :  { %1300 = vmatprep.subr.bf16.mxu1 %v1525_v1 }
  0x2b   :  { %1293 = vmatpush3.bf16.msra.mxu0 %v1401_v29 }
  0x2c   :  { %1306 = vmatprep.subr.bf16.mxu0 %v1525_v1 }
  0x2d   :  { %1301 = vmatpush3.bf16.msra.mxu1 %v1402_v31 }
  0x2e   :  { %1295 = vmatmul.mubr.msk.bf16.vlgmr.msra.gmra.mxu0 %vm131_vm1, %v113_v16  ;;  %1314 = vmatprep.subr.bf16.mxu1 %v1525_v1 }
  0x2f   :  { %1307 = vmatpush3.bf16.msra.mxu0 %v1403_v33  ;;  %1310 = vmatprep.mubr.msk.bf16.mxu0 %vm1526_vm0, %v1525_v1 }
  0x30   :  { %1308 = vmatprep.subr.bf16.mxu0 %v1525_v1  ;;  %1303 = vmatmul.mubr.msk.bf16.vlgmr.msra.gmra.mxu1 %vm131_vm1, %v103_v28 }
  0x31   :  { %1315 = vmatpush3.bf16.msra.mxu1 %v1404_v35  ;;  %1318 = vmatprep.mubr.msk.bf16.mxu1 %vm1526_vm0, %v1525_v1 }
  0x32   :  { %1316 = vmatprep.subr.bf16.mxu1 %v1525_v1 }
  0x33   :  { %1309 = vmatpush3.bf16.msra.mxu0 %v1405_v36 }
  0x34   :  { %1322 = vmatprep.subr.bf16.mxu0 %v1525_v1 }
  0x35   :  { %1317 = vmatpush3.bf16.msra.mxu1 %v1406_v37 }
  0x36   :  { %1311 = vmatmul.mubr.msk.bf16.vlgmr.msra.gmra.mxu0 %vm131_vm1, %v343_v38  ;;  %1330 = vmatprep.subr.bf16.mxu1 %v1525_v1 }
  0x37   :  { %1326 = vmatprep.mubr.msk.bf16.mxu0 %vm1526_vm0, %v1525_v1 }
  0x38   :  { %1319 = vmatmul.mubr.msk.bf16.vlgmr.msra.gmra.mxu1 %vm131_vm1, %v343_v38  ;;  %v1407_v38 = vld [vmem:[#allocation5 + $0x8] sm:$0xff]  }
  0x39   :  { %1334 = vmatprep.mubr.msk.bf16.mxu1 %vm1526_vm0, %v1525_v1  ;;  %1323 = vmatpush3.bf16.msra.mxu0 %v1407_v38 }
  0x3a   :  { %1324 = vmatprep.subr.bf16.mxu0 %v1525_v1 }
  0xe6   :  { %v169_v39 = vpop.f32.mrf.mxu0 }
  0xe8   :  { %v1280_v40 = vpop.f32.mrf.mxu0  ;;  %v225_v41 = vpop.f32.mrf.mxu1 }
  0xe9   :  { %v226_v15 = vadd.f32 %v225_v41, %v169_v39 }
  0xea   :  { %v172_v42 = vpop.f32.mrf.mxu0  ;;  %v1288_v43 = vpop.f32.mrf.mxu1 }
  0xec   :  { %v1281_v44 = vpop.f32.mrf.mxu0  ;;  %v228_v45 = vpop.f32.mrf.mxu1 }
  0xed   :  { %v229_v18 = vadd.f32 %v228_v45, %v172_v42  ;;  %v512_v45 = vsub.s32 1, %v1567_v2 }
  0xee   :  { %v283_v46 = vpop.f32.mrf.mxu0  ;;  %v1289_v47 = vpop.f32.mrf.mxu1 }
  0xf0   :  { %v1296_v48 = vpop.f32.mrf.mxu0  ;;  %v336_v49 = vpop.f32.mrf.mxu1 }
  0xf1   :  { %v337_v56 = vadd.f32 %v336_v49, %v283_v46  ;;  %v1663_v46 = vld [vmem:[%s1777_s3] sm:$0x1f] }
  0xf2   :  { %v286_v50 = vpop.f32.mrf.mxu0  ;;  %v1304_v51 = vpop.f32.mrf.mxu1  ;;  %v513_v49 = vrot.slane %v1663_v46, %v512_v45 }
  0xf4   :  { %v1297_v52 = vpop.f32.mrf.mxu0  ;;  %v339_v53 = vpop.f32.mrf.mxu1 }
  0xf5   :  { %v340_v62 = vadd.f32 %v339_v53, %v286_v50  ;;  %v518_v50 = vsub.s32 2, %v1567_v2 }
  0xf6   :  { %v398_v54 = vpop.f32.mrf.mxu0  ;;  %v1305_v55 = vpop.f32.mrf.mxu1 }
  0xf7   :  { %v405_v16 = vadd.f32 %v398_v54, %v226_v15  ;;  %v519_v54 = vrot.slane %v1663_v46, %v518_v50 }
  0xf8   :  { %v1312_v57 = vpop.f32.mrf.mxu0  ;;  %v458_v58 = vpop.f32.mrf.mxu1 }
  0xf9   :  { %v465_v59 = vadd.f32 %v458_v58, %v337_v56 }
  0xfa   :  { %v401_v60 = vpop.f32.mrf.mxu0  ;;  %v1320_v61 = vpop.f32.mrf.mxu1 }
  0xfb   :  { %v1203_v63 = vmul.f32 -1.442695, %v465_v59  ;;  %v406_v21 = vadd.f32 %v401_v60, %v229_v18  ;;  %v529_v59 = vsub.s32 0, %v1567_v2 }
  0xfc   :  { %v1313_v0 = vpop.f32.mrf.mxu0  ;;  %v461_v3 = vpop.f32.mrf.mxu1 }
  0xfd   :  { %1423 = vpow2.f32 %v1203_v63  ;;  %v466_v4 = vadd.f32 %v461_v3, %v340_v62  ;;  %v530_v60 = vrot.slane %v1663_v46, %v529_v59 }
  0xfe   :  { %v1321_v5 = vpop.f32.mrf.mxu1 }
  0xff   :  { %v1204_v6 = vmul.f32 -1.442695, %v466_v4 }
 0x101   :  { %1425 = vpow2.f32 %v1204_v6 }
 0x10a   :  { %v1424_v7 = vpop.eup %1423 }
 0x10b   :  { %v473_v8 = vadd.f32 1.0, %v1424_v7 }
 0x10d   :  { %1427 = vrcp.f32 %v473_v8 }
 0x10e   :  { %v1426_v9 = vpop.eup %1425 }
 0x10f   :  { %v474_v14 = vadd.f32 1.0, %v1426_v9 }
 0x111   :  { %1429 = vrcp.f32 %v474_v14 }
 0x11a   :  { %v1428_v17 = vpop.eup %1427 }
 0x11b   :  { %v479_v19 = vmul.f32 %v1428_v17, %v405_v16 }
 0x11d   :  { %v481_v22 = vadd.f32 %v479_v19, %v1578_v10 }
 0x11e   :  { %v1430_v23 = vpop.eup %1429 }
 0x11f   :  { %v483_v24 = vsel %vm131_vm1, %v481_v22, 0.0  ;;  %v480_v25 = vmul.f32 %v1430_v23, %v406_v21 }
 0x120   :  { %484 = vadd.xlane.f32.xlu0 %v483_v24  ;;  %v1409_v24 = vld [vmem:[#allocation2 + $0x78] sm:$0xff]  }
 0x121   :  { %v482_v26 = vadd.f32 %v480_v25, %v1583_v11  ;;  %v1408_v11 = vld [vmem:[#allocation5] sm:$0xff]   ;;  %1331 = vmatpush3.bf16.msra.mxu1 %v1409_v24  ;;  %v1410_v25 = vld [vmem:[#allocation2 + $0x70] sm:$0xff]  }
 0x122   :  { %1325 = vmatpush3.bf16.msra.mxu0 %v1408_v11  ;;  %1332 = vmatprep.subr.bf16.mxu1 %v1525_v1 }
 0x123   :  { %v486_v28 = vsel %vm131_vm1, %v482_v26, 0.0  ;;  %1338 = vmatprep.subr.bf16.mxu0 %v1525_v1 }
 0x124   :  { %487 = vadd.xlane.f32.xlu0 %v486_v28  ;;  %v1412_v28 = vld [vmem:[#allocation2 + $0x60] sm:$0xff]  }
 0x125   :  { %1333 = vmatpush3.bf16.msra.mxu1 %v1410_v25 }
 0x126   :  { %1346 = vmatprep.subr.bf16.mxu1 %v1525_v1 }
 0x1a9   :  { %v485_v29 = vpop.xlane.xlu0 %484 }
 0x1aa   :  { %v490_v30 = vmul.f32 0.03125, %v485_v29 }
 0x1ac   :  { %v492_v31 = vsub.f32 %v481_v22, %v490_v30 }
 0x1ad   :  { %v488_v32 = vpop.xlane.xlu0 %487 }
 0x1ae   :  { %v491_v33 = vmul.f32 0.03125, %v488_v32  ;;  %v494_v34 = vmul.f32 %v492_v31, %v492_v31 }
 0x1b0   :  { %v493_v35 = vsub.f32 %v482_v26, %v491_v33  ;;  %v496_v36 = vsel %vm131_vm1, %v494_v34, 0.0  ;;  %v1411_v26 = vld [vmem:[#allocation2 + $0x68] sm:$0xff]  }
 0x1b1   :  { %497 = vadd.xlane.f32.xlu1 %v496_v36 }
 0x1b2   :  { %v495_v10 = vmul.f32 %v493_v35, %v493_v35 }
 0x1b4   :  { %v499_v37 = vsel %vm131_vm1, %v495_v10, 0.0  ;;  %v623_v10 = vsub.s32 4, %v1567_v2 }
 0x1b5   :  { %500 = vadd.xlane.f32.xlu1 %v499_v37 }
 0x1b6   :  { %v624_v11 = vrot.slane %v1663_v46, %v623_v10 }
 0x23a   :  { %v498_v39 = vpop.xlane.xlu1 %497 }
 0x23b   :  { %v502_v40 = vmul.f32 0.03125, %v498_v39 }
 0x23d   :  { %v504_v41 = vadd.f32 1e-05, %v502_v40 }
 0x23e   :  { %v501_v42 = vpop.xlane.xlu1 %500 }
 0x23f   :  { %1431 = vrsqrt.f32 %v504_v41  ;;  %v503_v43 = vmul.f32 0.03125, %v501_v42 }
 0x241   :  { %v505_v44 = vadd.f32 1e-05, %v503_v43 }
 0x243   :  { %1433 = vrsqrt.f32 %v505_v44 }
 0x24c   :  { %v1432_v47 = vpop.eup %1431 }
 0x24d   :  { %v508_v48 = vmul.f32 %v1432_v47, %v492_v31  ;;  %v1413_v47 = vld [vmem:[#allocation2 + $0xa8] sm:$0xff]  }
 0x24f   :  { %v514_v53 = vmul.f32 %v513_v49, %v508_v48 }
 0x250   :  { %v1434_v51 = vpop.eup %1433 }
 0x251   :  { %v509_v52 = vmul.f32 %v1434_v51, %v493_v35  ;;  %v520_v56 = vadd.f32 %v519_v54, %v514_v53  ;;  %v617_v35 = vsub.s32 3, %v1567_v2 }
 0x253   :  { %v515_v55 = vmul.f32 %v513_v49, %v509_v52  ;;  %v618_v36 = vrot.slane %v1663_v46, %v617_v35 }
 0x255   :  { %v521_v57 = vadd.f32 %v519_v54, %v515_v55  ;;  %v1414_v55 = vld [vmem:[#allocation2 + $0xa0] sm:$0xff]  }
 0x257   :  { %v522_v58 = vpack.c.bf16 %v521_v57, %v520_v56 }
 0x259   :  { %1327 = vmatmul.mubr.msk.bf16.vlgmr.msra.gmra.mxu0 %vm131_vm1, %v522_v58 }
 0x25a   :  { %1342 = vmatprep.mubr.msk.bf16.mxu0 %vm1526_vm0, %v1525_v1  ;;  %1339 = vmatpush3.bf16.msra.mxu0 %v1411_v26 }
 0x25b   :  { %1340 = vmatprep.subr.bf16.mxu0 %v1525_v1 }
 0x25e   :  { %1341 = vmatpush3.bf16.msra.mxu0 %v1412_v28 }
 0x25f   :  { %1354 = vmatprep.subr.bf16.mxu0 %v1525_v1 }
 0x319   :  { %v580_v61 = vpop.f32.mrf.mxu0 }
 0x31a   :  { %v581_v62 = vadd.f32 %v580_v61, %v530_v60 }
 0x31b   :  { %v1328_v63 = vpop.f32.mrf.mxu0 }
 0x31c   :  { %v587_v0 = vadd.f32 %v581_v62, %v520_v56  ;;  %v1415_v56 = vld [vmem:[#allocation2 + $0x98] sm:$0xff]   ;;  %v1418_v63 = vld [vmem:[#allocation2 + $0x80] sm:$0xff]  }
 0x31d   :  { %v583_v3 = vpop.f32.mrf.mxu0 }
 0x31e   :  { %v584_v4 = vadd.f32 %v583_v3, %v530_v60  ;;  %v589_v5 = vsel %vm131_vm1, %v587_v0, 0.0  ;;  %v1416_v60 = vld [vmem:[#allocation2 + $0x90] sm:$0xff]  }
 0x31f   :  { %590 = vadd.xlane.f32.xlu0 %v589_v5  ;;  %v1329_v6 = vpop.f32.mrf.mxu0  ;;  %v1420_v5 = vld [vmem:[#allocation2 + $0xb0] sm:$0xff]  }
 0x320   :  { %v588_v7 = vadd.f32 %v584_v4, %v521_v57 }
 0x322   :  { %v592_v8 = vsel %vm131_vm1, %v588_v7, 0.0 }
 0x323   :  { %593 = vadd.xlane.f32.xlu1 %v592_v8 }
 0x3a8   :  { %v591_v9 = vpop.xlane.xlu0 %590 }
 0x3a9   :  { %v595_v14 = vmul.f32 0.03125, %v591_v9 }
 0x3ab   :  { %v597_v15 = vsub.f32 %v587_v0, %v595_v14  ;;  %v1419_v0 = vld [vmem:[#allocation2 + $0xb8] sm:$0xff]  }
 0x3ac   :  { %v594_v16 = vpop.xlane.xlu1 %593 }
 0x3ad   :  { %v596_v17 = vmul.f32 0.03125, %v594_v16  ;;  %v599_v18 = vmul.f32 %v597_v15, %v597_v15 }
 0x3af   :  { %v598_v19 = vsub.f32 %v588_v7, %v596_v17  ;;  %v601_v21 = vsel %vm131_vm1, %v599_v18, 0.0 }
 0x3b0   :  { %602 = vadd.xlane.f32.xlu0 %v601_v21 }
 0x3b1   :  { %v600_v22 = vmul.f32 %v598_v19, %v598_v19 }
 0x3b3   :  { %v604_v23 = vsel %vm131_vm1, %v600_v22, 0.0 }
 0x3b4   :  { %605 = vadd.xlane.f32.xlu1 %v604_v23 }
 0x439   :  { %v603_v29 = vpop.xlane.xlu0 %602 }
 0x43a   :  { %v607_v30 = vmul.f32 0.03125, %v603_v29 }
 0x43c   :  { %v609_v31 = vadd.f32 1e-05, %v607_v30 }
 0x43d   :  { %v606_v32 = vpop.xlane.xlu1 %605 }
 0x43e   :  { %1435 = vrsqrt.f32 %v609_v31  ;;  %v608_v33 = vmul.f32 0.03125, %v606_v32 }
 0x440   :  { %v610_v34 = vadd.f32 1e-05, %v608_v33 }
 0x442   :  { %1437 = vrsqrt.f32 %v610_v34 }
 0x44b   :  { %v1436_v37 = vpop.eup %1435 }
 0x44c   :  { %v613_v38 = vmul.f32 %v1436_v37, %v597_v15 }
 0x44e   :  { %v619_v39 = vmul.f32 %v618_v36, %v613_v38 }
 0x44f   :  { %v1438_v40 = vpop.eup %1437 }
 0x450   :  { %v614_v41 = vmul.f32 %v1438_v40, %v598_v19  ;;  %v1695_v42 = vadd.f32 %v624_v11, %v619_v39 }
 0x452   :  { %v620_v43 = vmul.f32 %v618_v36, %v614_v41  ;;  %v629_v49 = vrot.slane %v1695_v42, 7  ;;  %v635_v13 = vrot.slane %v1695_v42, 1 }
 0x454   :  { %v1697_v44 = vadd.f32 %v624_v11, %v620_v43 }
 0x456   :  { %v652_v48 = vpack.c.bf16 %v1697_v44, %v1695_v42  ;;  %v630_v51 = vrot.slane %v1697_v44, 7  ;;  %v636_v58 = vrot.slane %v1697_v44, 1 }
 0x458   :  { %1335 = vmatmul.mubr.msk.bf16.vlgmr.msra.gmra.mxu1 %vm131_vm1, %v652_v48  ;;  %v631_v46 = vsel %vm83_vm2, %v629_v49, %v630_v51  ;;  %v632_v52 = vsel %vm83_vm2, %v630_v51, %v629_v49  ;;  %v637_v61 = vsel %vm94_vm3, %v635_v13, %v636_v58  ;;  %v638_v62 = vsel %vm94_vm3, %v636_v58, %v635_v13 }
 0x459   :  { %1347 = vmatpush3.bf16.msra.mxu1 %v1413_v47  ;;  %v633_v53 = vsel %vm1585_vm4, %v632_v52, 0.0  ;;  %v634_v54 = vsel %vm1589_vm5, %v631_v46, 0.0  ;;  %1350 = vmatprep.mubr.msk.bf16.mxu1 %vm1526_vm0, %v1525_v1  ;;  %v639_v3 = vsel %vm1600_vm6, %v637_v61, 0.0  ;;  %v640_v4 = vsel %vm1616_vm7, %v638_v62, 0.0 }
 0x45a   :  { %v641_v57 = vpack.c.bf16 %v634_v54, %v633_v53  ;;  %1348 = vmatprep.subr.bf16.mxu1 %v1525_v1  ;;  %v881_v6 = vpack.c.bf16 %v640_v4, %v639_v3 }
 0x45c   :  { %1343 = vmatmul.mubr.msk.bf16.vlgmr.msra.gmra.mxu0 %vm131_vm1, %v641_v57 }
 0x45d   :  { %1349 = vmatpush3.bf16.msra.mxu1 %v1414_v55  ;;  %1355 = vmatpush3.bf16.msra.mxu0 %v1415_v56 }
 0x45e   :  { %1356 = vmatprep.subr.bf16.mxu0 %v1525_v1  ;;  %1362 = vmatprep.subr.bf16.mxu1 %v1525_v1 }
 0x45f   :  { %1358 = vmatprep.mubr.msk.bf16.mxu0 %vm1526_vm0, %v1525_v1 }
 0x460   :  { %1351 = vmatmul.mubr.msk.bf16.vlgmr.msra.gmra.mxu1 %vm131_vm1, %v652_v48 }
 0x461   :  { %1357 = vmatpush3.bf16.msra.mxu0 %v1416_v60  ;;  %1363 = vmatpush3.bf16.msra.mxu1 %v1417_v12 }
 0x462   :  { %1364 = vmatprep.subr.bf16.mxu1 %v1525_v1  ;;  %1370 = vmatprep.subr.bf16.mxu0 %v1525_v1 }
 0x463   :  { %1366 = vmatprep.mubr.msk.bf16.mxu1 %vm1526_vm0, %v1525_v1 }
 0x464   :  { %1359 = vmatmul.mubr.msk.bf16.vlgmr.msra.gmra.mxu0 %vm131_vm1, %v641_v57 }
 0x465   :  { %1365 = vmatpush3.bf16.msra.mxu1 %v1418_v63  ;;  %1371 = vmatpush3.bf16.msra.mxu0 %v1419_v0 }
 0x466   :  { %1372 = vmatprep.subr.bf16.mxu0 %v1525_v1  ;;  %1374 = vmatprep.mubr.msk.bf16.mxu0 %vm1526_vm0, %v1525_v1 }
 0x467   :  { %1378 = vmatprep.subr.bf16.mxu1 %v1525_v1 }
 0x468   :  { %1367 = vmatmul.mubr.msk.bf16.vlgmr.msra.gmra.mxu1 %vm131_vm1, %v881_v6 }
 0x469   :  { %1373 = vmatpush3.bf16.msra.mxu0 %v1420_v5  ;;  %1382 = vmatprep.mubr.msk.bf16.mxu1 %vm1526_vm0, %v1525_v1 }
 0x46c   :  { %1375 = vmatmul.mubr.msk.bf16.vlgmr.msra.gmra.mxu0 %vm131_vm1, %v881_v6 }
 0x518   :  { %v707_v20 = vpop.f32.mrf.mxu1 }
 0x51a   :  { %v1336_v27 = vpop.f32.mrf.mxu1 }
 0x51c   :  { %v710_v7 = vpop.f32.mrf.mxu1  ;;  %v763_v8 = vpop.f32.mrf.mxu0 }
 0x51d   :  { %v764_v49 = vadd.f32 %v763_v8, %v707_v20  ;;  %v1421_v20 = vld [vmem:[#allocation5 + $0x18] sm:$0xff]  }
 0x51e   :  { %v1337_v9 = vpop.f32.mrf.mxu1  ;;  %v1344_v14 = vpop.f32.mrf.mxu0  ;;  %1379 = vmatpush3.bf16.msra.mxu1 %v1421_v20 }
 0x51f   :  { %1380 = vmatprep.subr.bf16.mxu1 %v1525_v1 }
 0x520   :  { %v766_v15 = vpop.f32.mrf.mxu0  ;;  %v821_v16 = vpop.f32.mrf.mxu1 }
 0x521   :  { %v767_v52 = vadd.f32 %v766_v15, %v710_v7 }
 0x522   :  { %v1345_v17 = vpop.f32.mrf.mxu0  ;;  %v1352_v18 = vpop.f32.mrf.mxu1 }
 0x524   :  { %v824_v19 = vpop.f32.mrf.mxu1  ;;  %v874_v21 = vpop.f32.mrf.mxu0 }
 0x525   :  { %v875_v29 = vadd.f32 %v874_v21, %v821_v16  ;;  %v1208_v16 = vld [vmem:[%s1777_s3 + $0x8] sm:$0x1f]  ;;  %s1527_s3 = smov [#allocation7]  }
 0x526   :  { %v1353_v22 = vpop.f32.mrf.mxu1  ;;  %v1360_v23 = vpop.f32.mrf.mxu0  ;;  %s1172_s6 = sshll.u32 %s1527_s3, 4  ;;  %s1173_s6 = int_to_ptr.vmem [resolvable:$true] %s1172_s6 }
 0x527   :  { %v1056_v23 = vrot.slane %v1208_v16, %v518_v50  ;;  %s1495_s7 = scalar_lea.vmem %s1173_s6, 256  ;;  %p1500_p11 = scmp.lt.s32.totalorder %s1173_s6, %s1173_s6 }
 0x528   :  { %v877_v24 = vpop.f32.mrf.mxu0  ;;  %v936_v25 = vpop.f32.mrf.mxu1  ;;  %p1496_p10 = scmp.ne.s32.totalorder %s1173_s6, %s1495_s7  ;;  %p1501_p12 = scmp.lt.s32.totalorder %s1495_s7, %s1495_s7 }
 0x529   :  { %v878_v36 = vadd.f32 %v877_v24, %v824_v19  ;;  %v943_v51 = vadd.f32 %v936_v25, %v764_v49  ;;  %v1050_v19 = vrot.slane %v1208_v16, %v512_v45 }
 0x52a   :  { %v1361_v26 = vpop.f32.mrf.mxu0  ;;  %v1368_v28 = vpop.f32.mrf.mxu1  ;;  %p1502_p13 = por %p1501_p12, %p1500_p11 }
 0x52c   :  { %v939_v30 = vpop.f32.mrf.mxu1  ;;  %v996_v31 = vpop.f32.mrf.mxu0  ;;  %p1503_p0 = pnand %p1502_p13, %p1496_p10 }
 0x52d   :  { %v1003_v32 = vadd.f32 %v996_v31, %v875_v29  ;;  %v944_v54 = vadd.f32 %v939_v30, %v767_v52  ;;  %v1068_v29 = vrot.slane %v1208_v16, %v529_v59 }
 0x52e   :  { %v1369_v33 = vpop.f32.mrf.mxu1  ;;  %v1376_v34 = vpop.f32.mrf.mxu0 }
 0x52f   :  { %v1227_v37 = vmul.f32 -1.442695, %v1003_v32 }
 0x530   :  { %v999_v38 = vpop.f32.mrf.mxu0 }
 0x531   :  { %1439 = vpow2.f32 %v1227_v37  ;;  %v1004_v11 = vadd.f32 %v999_v38, %v878_v36 }
 0x532   :  { %v1377_v39 = vpop.f32.mrf.mxu0 }
 0x533   :  { %v1228_v40 = vmul.f32 -1.442695, %v1004_v11 }
 0x535   :  { %1441 = vpow2.f32 %v1228_v40 }
 0x53e   :  { %v1440_v41 = vpop.eup %1439 }
 0x53f   :  { %v1011_v43 = vadd.f32 1.0, %v1440_v41 }
 0x541   :  { %1443 = vrcp.f32 %v1011_v43 }
 0x542   :  { %v1442_v47 = vpop.eup %1441 }
 0x543   :  { %v1012_v48 = vadd.f32 1.0, %v1442_v47 }
 0x545   :  { %1445 = vrcp.f32 %v1012_v48 }
 0x54e   :  { %v1444_v46 = vpop.eup %1443 }
 0x54f   :  { %v1017_v53 = vmul.f32 %v1444_v46, %v943_v51 }
 0x551   :  { %v1019_v55 = vadd.f32 %v1017_v53, %v1695_v42 }
 0x552   :  { %v1446_v56 = vpop.eup %1445 }
 0x553   :  { %v1021_v57 = vsel %vm131_vm1, %v1019_v55, 0.0  ;;  %v1018_v58 = vmul.f32 %v1446_v56, %v944_v54 }
 0x554   :  { %1022 = vadd.xlane.f32.xlu0 %v1021_v57  ;;  %v1156_v57 = vrot.slane %v1208_v16, %v617_v35 }
 0x555   :  { %v1020_v60 = vadd.f32 %v1018_v58, %v1697_v44  ;;  %v1422_v44 = vld [vmem:[#allocation5 + $0x10] sm:$0xff]  }
 0x556   :  { %1381 = vmatpush3.bf16.msra.mxu1 %v1422_v44 }
 0x557   :  { %v1024_v12 = vsel %vm131_vm1, %v1020_v60, 0.0 }
 0x558   :  { %1025 = vadd.xlane.f32.xlu1 %v1024_v12  ;;  %v1162_v12 = vrot.slane %v1208_v16, %v623_v10 }
 0x5dd   :  { %v1023_v13 = vpop.xlane.xlu0 %1022 }
 0x5de   :  { %v1027_v61 = vmul.f32 0.03125, %v1023_v13 }
 0x5e0   :  { %v1029_v62 = vsub.f32 %v1019_v55, %v1027_v61 }
 0x5e1   :  { %v1026_v63 = vpop.xlane.xlu1 %1025 }
 0x5e2   :  { %v1028_v0 = vmul.f32 0.03125, %v1026_v63  ;;  %v1031_v3 = vmul.f32 %v1029_v62, %v1029_v62 }
 0x5e4   :  { %v1030_v4 = vsub.f32 %v1020_v60, %v1028_v0  ;;  %v1033_v5 = vsel %vm131_vm1, %v1031_v3, 0.0 }
 0x5e5   :  { %1034 = vadd.xlane.f32.xlu0 %v1033_v5 }
 0x5e6   :  { %v1032_v42 = vmul.f32 %v1030_v4, %v1030_v4 }
 0x5e8   :  { %v1036_v6 = vsel %vm131_vm1, %v1032_v42, 0.0 }
 0x5e9   :  { %1037 = vadd.xlane.f32.xlu1 %v1036_v6 }
 0x66e   :  { %v1035_v27 = vpop.xlane.xlu0 %1034 }
 0x66f   :  { %v1039_v7 = vmul.f32 0.03125, %v1035_v27 }
 0x671   :  { %v1041_v8 = vadd.f32 1e-05, %v1039_v7 }
 0x672   :  { %v1038_v9 = vpop.xlane.xlu1 %1037 }
 0x673   :  { %1447 = vrsqrt.f32 %v1041_v8  ;;  %v1040_v14 = vmul.f32 0.03125, %v1038_v9 }
 0x675   :  { %v1042_v15 = vadd.f32 1e-05, %v1040_v14 }
 0x677   :  { %1449 = vrsqrt.f32 %v1042_v15 }
 0x680   :  { %v1448_v17 = vpop.eup %1447 }
 0x681   :  { %v1045_v18 = vmul.f32 %v1448_v17, %v1029_v62 }
 0x683   :  { %v1051_v22 = vmul.f32 %v1050_v19, %v1045_v18 }
 0x684   :  { %v1450_v21 = vpop.eup %1449 }
 0x685   :  { %v1046_v1 = vmul.f32 %v1450_v21, %v1030_v4  ;;  %v1057_v25 = vadd.f32 %v1056_v23, %v1051_v22 }
 0x687   :  { %v1052_v24 = vmul.f32 %v1050_v19, %v1046_v1 }
 0x689   :  { %v1058_v26 = vadd.f32 %v1056_v23, %v1052_v24 }
 0x68b   :  { %v1059_v28 = vpack.c.bf16 %v1058_v26, %v1057_v25 }
 0x68d   :  { %1383 = vmatmul.mubr.msk.bf16.vlgmr.msra.gmra.mxu1 %vm131_vm1, %v1059_v28 }
 0x74d   :  { %v1118_v30 = vpop.f32.mrf.mxu1 }
 0x74e   :  { %v1119_v31 = vadd.f32 %v1118_v30, %v1068_v29 }
 0x74f   :  { %v1384_v32 = vpop.f32.mrf.mxu1 }
 0x750   :  { %v1125_v33 = vadd.f32 %v1119_v31, %v1057_v25 }
 0x751   :  { %v1121_v45 = vpop.f32.mrf.mxu1 }
 0x752   :  { %v1122_v34 = vadd.f32 %v1121_v45, %v1068_v29  ;;  %v1127_v36 = vsel %vm131_vm1, %v1125_v33, 0.0 }
 0x753   :  { %1128 = vadd.xlane.f32.xlu0 %v1127_v36  ;;  %v1385_v37 = vpop.f32.mrf.mxu1 }
 0x754   :  { %v1126_v50 = vadd.f32 %v1122_v34, %v1058_v26 }
 0x756   :  { %v1130_v38 = vsel %vm131_vm1, %v1126_v50, 0.0 }
 0x757   :  { %1131 = vadd.xlane.f32.xlu1 %v1130_v38 }
 0x7dc   :  { %v1129_v11 = vpop.xlane.xlu0 %1128 }
 0x7dd   :  { %v1133_v39 = vmul.f32 0.03125, %v1129_v11 }
 0x7df   :  { %v1135_v40 = vsub.f32 %v1125_v33, %v1133_v39 }
 0x7e0   :  { %v1132_v41 = vpop.xlane.xlu1 %1131 }
 0x7e1   :  { %v1134_v43 = vmul.f32 0.03125, %v1132_v41  ;;  %v1137_v59 = vmul.f32 %v1135_v40, %v1135_v40 }
 0x7e3   :  { %v1136_v47 = vsub.f32 %v1126_v50, %v1134_v43  ;;  %v1139_v48 = vsel %vm131_vm1, %v1137_v59, 0.0 }
 0x7e4   :  { %1140 = vadd.xlane.f32.xlu0 %v1139_v48 }
 0x7e5   :  { %v1138_v49 = vmul.f32 %v1136_v47, %v1136_v47 }
 0x7e7   :  { %v1142_v51 = vsel %vm131_vm1, %v1138_v49, 0.0 }
 0x7e8   :  { %1143 = vadd.xlane.f32.xlu1 %v1142_v51 }
 0x86d   :  { %v1141_v46 = vpop.xlane.xlu0 %1140 }
 0x86e   :  { %v1145_v52 = vmul.f32 0.03125, %v1141_v46 }
 0x870   :  { %v1147_v53 = vadd.f32 1e-05, %v1145_v52 }
 0x871   :  { %v1144_v54 = vpop.xlane.xlu1 %1143 }
 0x872   :  { %1451 = vrsqrt.f32 %v1147_v53  ;;  %v1146_v55 = vmul.f32 0.03125, %v1144_v54 }
 0x874   :  { %v1148_v56 = vadd.f32 1e-05, %v1146_v55 }
 0x876   :  { %1453 = vrsqrt.f32 %v1148_v56 }
 0x87f   :  { %v1452_v58 = vpop.eup %1451 }
 0x880   :  { %v1151_v60 = vmul.f32 %v1452_v58, %v1135_v40 }
 0x882   :  { %v1157_v13 = vmul.f32 %v1156_v57, %v1151_v60 }
 0x883   :  { %v1454_v61 = vpop.eup %1453 }
 0x884   :  { %v1152_v62 = vmul.f32 %v1454_v61, %v1136_v47  ;;  %v1163_v63 = vadd.f32 %v1162_v12, %v1157_v13 }
 0x886   :  { %v1158_v0 = vmul.f32 %v1156_v57, %v1152_v62  ;;  %1165 = vst.msk [vmem:[#allocation7] sm:$0xff] %vm131_vm1, %v1163_v63 }
 0x888   :  { %v1164_v3 = vadd.f32 %v1162_v12, %v1158_v0 }
 0x88a   :  { %1166 = vst.msk [vmem:[#allocation7 + $0x8] sm:$0xff] %vm131_vm1, %v1164_v3 }
 0x88b   :  { %1506 = shalt.err (!%p1503_p0)
}
 0x88c   :  { %s1528_s8 = smov 128   ;;  %s1529_s9 = smov 8  }
 0x88d   :  { %1178 = dma.vmem_to_hbm [thread:$0]  %s1173_s6, 256, %s1778_s4, [#allocation4], %s1528_s8, %s1528_s8, %s1529_s9  }
 0x88e   :  { %1519 = dma.done.wait [#allocation4], 256  }
 0x88f   :  { %1520 = vsyncadd [#allocation4], 4294967040 }
 0x890   :  { %1182 = vsyncpa [#allocation3], 1 }
 0x891   :  { %1183 = vsyncpa [#allocation6], 1 }
 0x892   :  { %1184 = vsyncpa [#allocation4], 1 }

</bundles_post_ra>
